<compile_context>
chip_gen: v6e
topology: v6e:2x2x1
jax: 0.10.0
libtpu: 0.0.40
codegen_flags: <defaults>
</compile_context>

<pallas_src>
import functools
import math

import jax
import jax.numpy as jnp
import numpy as np
from jax.experimental import pallas as pl
from jax.experimental.pallas import tpu as pltpu


def _modconv_kernel(s_ref, w_ref, x_ref, o_ref, *, c_scale, eps, demodulate):
    # s_ref: (1, 1, K)         style for this batch element, tiled k*k times over K
    # w_ref: (co_tile, K)      unmodulated equalized weight slice, K = k*k*C_in
    # x_ref: (1, K, hw_tile)   im2col'd input slice for this batch element
    # o_ref: (1, co_tile, hw_tile)
    s = s_ref[0].astype(jnp.float32)                       # (1, K)
    w = w_ref[...].astype(jnp.float32) * c_scale           # equalized-lr scale
    w_mod = w * s                                          # modulate per (tap, c_in)
    if demodulate:
        sigma_inv = jax.lax.rsqrt(
            jnp.sum(w_mod * w_mod, axis=1, keepdims=True) + eps)   # (co_tile, 1)
        w_mod = w_mod * sigma_inv
    x = x_ref[0]                                           # (K, hw_tile), input dtype
    # Single MXU matmul: bf16/f32 operands, f32 accumulation.
    y = jnp.dot(w_mod.astype(x.dtype), x, preferred_element_type=jnp.float32)
    o_ref[...] = y[None].astype(o_ref.dtype)               # lane-dense store


def _pick_tile(total, candidates):
    for cand in candidates:
        if total > cand and total % cand == 0:
            return cand
    return total


def conv2d_weight_modulate(x, s, weight, *, demodulate=True, eps=1e-8):
    """x: [B, C_in, H, W], s: [B, C_in], weight: [C_out, C_in, k, k] -> [B, C_out, H, W]."""
    B, C_in, H, W = x.shape
    C_out, C_in_w, k, k2 = weight.shape
    assert C_in_w == C_in and k == k2
    pad = (k - 1) // 2
    HW = H * W
    Kdim = k * k * C_in
    c_scale = 1.0 / math.sqrt(C_in * k * k)          # EqualizedWeight constant

    # ---- plain-JAX layout plumbing (outside the grid) -----------------------
    # im2col: x_cols[b, t*C_in + ci, i*W + j] = x_pad[b, ci, i + kh, j + kw]
    # TODO(synk): on mem-bound v5e an in-kernel pltpu.roll over the padded plane
    # would avoid the k^2 x-read HBM traffic of the wrapper im2col.
    x_pad = jnp.pad(x, ((0, 0), (0, 0), (pad, pad), (pad, pad)))
    taps = [x_pad[:, :, kh:kh + H, kw:kw + W]
            for kh in range(k) for kw in range(k)]           # k*k x (B, C_in, H, W)
    x_cols = jnp.stack(taps, axis=1).reshape(B, Kdim, HW)
    # weight OIHW -> (C_out, (kh, kw, ci)) to match x_cols' K ordering
    w_flat = jnp.transpose(weight, (0, 2, 3, 1)).reshape(C_out, Kdim)
    # style tiled k*k times so modulation is a plain broadcast along K
    s_tiled = jnp.tile(s, (1, k * k)).reshape(B, 1, Kdim)

    co_tile = _pick_tile(C_out, (256, 128))
    hw_tile = _pick_tile(HW, (2048, 1024, 512))
    n_co = C_out // co_tile
    n_hw = HW // hw_tile

    kernel = functools.partial(
        _modconv_kernel, c_scale=c_scale, eps=eps, demodulate=demodulate)

    out = pl.pallas_call(
        kernel,
        out_shape=jax.ShapeDtypeStruct((B, C_out, HW), x.dtype),
        grid_spec=pltpu.PrefetchScalarGridSpec(
            num_scalar_prefetch=0,
            grid=(B, n_co, n_hw),
            in_specs=[
                pl.BlockSpec((1, 1, Kdim), lambda b, co, hw: (b, 0, 0)),
                pl.BlockSpec((co_tile, Kdim), lambda b, co, hw: (co, 0)),
                pl.BlockSpec((1, Kdim, hw_tile), lambda b, co, hw: (b, 0, hw)),
            ],
            out_specs=pl.BlockSpec((1, co_tile, hw_tile),
                                   lambda b, co, hw: (b, co, hw)),
        ),
        compiler_params=pltpu.CompilerParams(
            dimension_semantics=("parallel", "parallel", "parallel"),
            vmem_limit_bytes=48 * 1024 * 1024),
    )(s_tiled, w_flat, x_cols)
    return out.reshape(B, C_out, H, W)


def _reference(x, s, weight, *, demodulate=True, eps=1e-8):
    """Pure-JAX reference mirroring the PyTorch forward (grouped conv)."""
    B, C_in, H, W = x.shape
    C_out, _, k, _ = weight.shape
    pad = (k - 1) // 2
    c = 1.0 / math.sqrt(C_in * k * k)
    w = weight * c
    ws = w[None] * s[:, None, :, None, None]                      # [B,Co,Ci,k,k]
    if demodulate:
        sigma_inv = jax.lax.rsqrt(
            jnp.sum(ws * ws, axis=(2, 3, 4), keepdims=True) + eps)
        ws = ws * sigma_inv
    xr = x.reshape(1, B * C_in, H, W)
    wr = ws.reshape(B * C_out, C_in, k, k)
    y = jax.lax.conv_general_dilated(
        xr, wr, window_strides=(1, 1), padding=[(pad, pad), (pad, pad)],
        dimension_numbers=('NCHW', 'OIHW', 'NCHW'), feature_group_count=B)
    return y.reshape(B, C_out, H, W)


if __name__ == "__main__":
    B, C_in, C_out, H, W, K = 2, 4, 4, 16, 16, 3

    key = jax.random.PRNGKey(0)
    kx, ks, kw = jax.random.split(key, 3)
    x = jax.random.normal(kx, (B, C_in, H, W), dtype=jnp.float32)
    s = jax.random.normal(ks, (B, C_in), dtype=jnp.float32)
    # EqualizedWeight: parameter drawn from N(0, 1); the 1/sqrt(fan_in) scale is
    # applied inside the kernel (c_scale).
    weight = jax.random.normal(kw, (C_out, C_in, K, K), dtype=jnp.float32)

    out = conv2d_weight_modulate(x, s, weight, demodulate=True, eps=1e-8)
    out = jax.block_until_ready(out)

    ref = jax.block_until_ready(_reference(x, s, weight, demodulate=True, eps=1e-8))
    np.testing.assert_allclose(np.asarray(out), np.asarray(ref), rtol=1e-5, atol=1e-5)

    print("KERNEL_OK")
</pallas_src>

<mosaic_0001>
module attributes {stable_mosaic.version = 11 : i64} {
  func.func @_modconv_kernel(%arg0: i32, %arg1: i32, %arg2: i32, %arg3: memref<1x1x36xf32, #tpu.memory_space<vmem>>, %arg4: memref<4x36xf32, #tpu.memory_space<vmem>>, %arg5: memref<1x36x256xf32, #tpu.memory_space<vmem>>, %arg6: memref<1x4x256xf32, #tpu.memory_space<vmem>>) attributes {dimension_semantics = [#tpu.dimension_semantics<parallel>, #tpu.dimension_semantics<parallel>, #tpu.dimension_semantics<parallel>], iteration_bounds = array<i64: 2, 1, 1>, scalar_prefetch = 0 : i64, scratch_operands = 0 : i64, tpu.core_type = #tpu.core_type<tc>, window_params = [{transform_indices = @transform_0, window_bounds = array<i64: 1, 1, 36>}, {transform_indices = @transform_1, window_bounds = array<i64: 4, 36>}, {transform_indices = @transform_2, window_bounds = array<i64: 1, 36, 256>}, {transform_indices = @transform_3, window_bounds = array<i64: 1, 4, 256>}]} {
    %c0 = arith.constant 0 : index
    %c0_0 = arith.constant 0 : index
    %c0_1 = arith.constant 0 : index
    %0 = vector.load %arg3[%c0, %c0_0, %c0_1] : memref<1x1x36xf32, #tpu.memory_space<vmem>>, vector<1x1x36xf32>
    %1 = vector.shape_cast %0 : vector<1x1x36xf32> to vector<1x36xf32>
    %c0_2 = arith.constant 0 : index
    %c0_3 = arith.constant 0 : index
    %2 = vector.load %arg4[%c0_2, %c0_3] : memref<4x36xf32, #tpu.memory_space<vmem>>, vector<4x36xf32>
    %cst = arith.constant 0.166666672 : f32
    %3 = vector.broadcast %cst : f32 to vector<4x36xf32>
    %4 = arith.mulf %2, %3 : vector<4x36xf32>
    %5 = vector.broadcast %1 : vector<1x36xf32> to vector<4x36xf32>
    %6 = arith.mulf %4, %5 : vector<4x36xf32>
    %7 = arith.mulf %6, %6 : vector<4x36xf32>
    %cst_4 = arith.constant dense<0.000000e+00> : vector<4xf32>
    %8 = vector.multi_reduction <add>, %7, %cst_4 [1] : vector<4x36xf32> to vector<4xf32>
    %9 = vector.shape_cast %8 : vector<4xf32> to vector<4x1xf32>
    %cst_5 = arith.constant 9.99999993E-9 : f32
    %10 = vector.broadcast %cst_5 : f32 to vector<4x1xf32>
    %11 = arith.addf %9, %10 : vector<4x1xf32>
    %12 = math.rsqrt %11 : vector<4x1xf32>
    %13 = vector.broadcast %12 : vector<4x1xf32> to vector<4x36xf32>
    %14 = arith.mulf %6, %13 : vector<4x36xf32>
    %c0_6 = arith.constant 0 : index
    %c0_7 = arith.constant 0 : index
    %c0_8 = arith.constant 0 : index
    %15 = vector.load %arg5[%c0_6, %c0_7, %c0_8] : memref<1x36x256xf32, #tpu.memory_space<vmem>>, vector<1x36x256xf32>
    %16 = vector.shape_cast %15 : vector<1x36x256xf32> to vector<36x256xf32>
    %cst_9 = arith.constant dense<0.000000e+00> : vector<4x256xf32>
    %17 = tpu.matmul %14, %16, %cst_9 {dimension_numbers = #tpu.dot_dimension_numbers<[1], [0], [0], [1], [0, 0, 1, 1], [], []>} : vector<4x36xf32>, vector<36x256xf32>, vector<4x256xf32> -> vector<4x256xf32>
    %18 = vector.shape_cast %17 : vector<4x256xf32> to vector<1x4x256xf32>
    %c0_10 = arith.constant 0 : index
    %c0_11 = arith.constant 0 : index
    %c0_12 = arith.constant 0 : index
    %19 = vector.load %arg6[%c0_10, %c0_11, %c0_12] : memref<1x4x256xf32, #tpu.memory_space<vmem>>, vector<1x4x256xf32>
    tpu.vector_store %arg6[%c0_10, %c0_11, %c0_12], %18 {strides = array<i32>} : memref<1x4x256xf32, #tpu.memory_space<vmem>>, vector<1x4x256xf32>,
    return
  }
  func.func @transform_0(%arg0: i32, %arg1: i32, %arg2: i32) -> (i32, i32, i32) {
    %c0_i32 = arith.constant 0 : i32
    %c0_i32_0 = arith.constant 0 : i32
    %c0_i32_1 = arith.constant 0 : i32
    return %arg0, %c0_i32, %c0_i32_0 : i32, i32, i32
  }
  func.func @transform_1(%arg0: i32, %arg1: i32, %arg2: i32) -> (i32, i32) {
    %c0_i32 = arith.constant 0 : i32
    %c0_i32_0 = arith.constant 0 : i32
    return %arg1, %c0_i32 : i32, i32
  }
  func.func @transform_2(%arg0: i32, %arg1: i32, %arg2: i32) -> (i32, i32, i32) {
    %c0_i32 = arith.constant 0 : i32
    %c0_i32_0 = arith.constant 0 : i32
    return %arg0, %c0_i32, %arg2 : i32, i32, i32
  }
  func.func @transform_3(%arg0: i32, %arg1: i32, %arg2: i32) -> (i32, i32, i32) {
    %c0_i32 = arith.constant 0 : i32
    return %arg0, %arg1, %arg2 : i32, i32, i32
  }
}

</mosaic_0001>

<bundles_post_ra>
// kernel: tpu_custom_call.1
= control target key start
LH: loop header
LB: loop body
LE: loop exit
PB: predicated region body
PF: predicated region fallthrough
CT: control target
= control target key end

     0   :  { %8 = vsyncpa [#allocation3], 0  ;;  %s761_s0 = inlined_call_operand.vmem [shape: f32[2,1,36], index: 0, kind: input, shape index: {}]   ;;  %s762_s1 = inlined_call_operand.vmem [shape: f32[4,36], index: 1, kind: input, shape index: {}]   ;;  %s763_s2 = inlined_call_operand.vmem [shape: f32[2,36,256], index: 2, kind: input, shape index: {}]   ;;  %s764_s3 = inlined_call_operand.hbm [shape: f32[2,4,256], index: 3, kind: output, shape index: {}]  }
   0x1   :  { %10 = vsyncpa [#allocation3 + $0x1], 0  ;;  %s656_s12 = smov 0   ;;  %s658_s13 = smov 0  }
   0x2   :  { %s660_s14 = smov 0   ;;  %s662_s15 = smov 0  }
   0x3   :  { %s664_s16 = smov 0   ;;  %s666_s17 = smov 0  }
   0x4 LB: > { %s479_s18 = sadd.s32 4294967295, %s632_s17   ;;  %s480_s19 = sadd.s32 4294967294, %s632_s17   ;;  %s632_s17 = sphi %s666_s17, %s16_s17   ;;  %s628_s16 = sphi %s664_s16, %s771_s16   ;;  %s624_s15 = sphi %s662_s15, %s770_s15   ;;  %s620_s14 = sphi %s660_s14, %s769_s14   ;;  %s616_s13 = sphi %s658_s13, %s768_s13   ;;  %s612_s12 = sphi %s656_s12, %s767_s12  }
   0x5   : > { %s35_s20 = sadd.s32 1, %s628_s16  ;;  %s126_s21 = sadd.s32 1, %s620_s14 }
   0x6   : > { %p37_p0 = scmp.ge.s32.totalorder %s35_s20, 2  ;;  %p136_p1 = scmp.ne.s32.totalorder %s620_s14, %s616_s13 }
   0x7   : > { %p137_p2 = scmp.eq.s32.totalorder %s479_s18, 1  ;;  %p142_p3 = scmp.ne.s32.totalorder %s616_s13, %s612_s12 }
   0x8   : > { %s773_s20 = smov (%p37_p0, %s35_s20), 0  ;;  %p143_p5 = scmp.eq.s32.totalorder %s480_s19, 1 }
   0x9   : > { %p696_p4 = por %p137_p2, %p136_p1  ;;  %s119_s23 = ssub.s32 %s628_s16, %s773_s20 }
   0xa   : > { %p484_p6 = scmp.ge.s32.totalorder %s632_s17, 1  ;;  %p124_p7 = scmp.eq.s32.totalorder %s119_s23, 0 }
   0xb   : > { %p703_p8 = por %p143_p5, %p142_p3  ;;  %p187_p9 = scmp.lt.s32.totalorder %s632_s17, 3 }
   0xc   : > { %s709_s25 = scalar_select %p124_p7, %s620_s14, %s126_s21  }
   0xd   : > { %p188_p10 = pnand %p484_p6, %p187_p9 }
   0xe   : > { %p222_p11 = scmp.lt.s32.totalorder (!%p188_p10), %s624_s15, 1  ;;  %s219_s9 = sand.u32 (!%p188_p10), 1, %s616_s13  }
   0xf   : > { %191 = sbr.rel (%p188_p10) target bundleno = 395 (0x18b), region = 32  ;;  %s485_s10 = sshll.u32 (!%p188_p10), %s219_s9, 3 }
  0x10   : > { %s496_s11 = sshll.u32 (!%p188_p10), %s624_s15, 7  ;;  %s221_s18 = scalar_lea.vmem (!%p188_p10), [#allocation2], %s485_s10 }
  0x11   : > { %s374_s19 = sshll.u32 (!%p188_p10), %s221_s18, 4  ;;  %s372_s26 = scalar_lea.hbm (!%p188_p10), %s764_s3, %s496_s11  ;;  %s375_s19 = int_to_ptr.vmem [resolvable:$true] %s374_s19 }
  0x12   : > { %s356_s27 = scalar_lea.sflag (!%p188_p10), [#allocation3], %s219_s9  ;;  %s635_s29 = smov (!%p188_p10), [#allocation2]  }
  0x13   : > { %s560_s30 = sshll.u32 (!%p188_p10), %s635_s29, 4  ;;  %s561_s30 = int_to_ptr.vmem [resolvable:$false] %s560_s30 }
  0x14   : > { %v241_v0 = vld [vmem:[%s762_s1] sm:$0xf]  ;;  %s223_s28 = scalar_select %p222_p11, %s624_s15, 1  ;;  %vm251_vm0 = vcmask 289792   ;;  %vm272_vm1 = vcmask 1043456   ;;  %v634_v11 = vmov 0.0  }
  0x15   : > { %v242_v1 = vmul.f32 0.16666667, %v241_v0  ;;  %343 = vmatprep.mubr.f32.mxu0 %v634_v11  ;;  %vm268_vm2 = vcmask 293888   ;;  %s562_s15 = scalar_lea.vmem %s561_s30, 256  ;;  %p563_p1 = scmp.lt.s32.totalorder %s375_s19, %s561_s30 }
  0x16   : > { %s224_s4 = scalar_lea.vmem %s761_s0, %s223_s28  ;;  %s497_s5 = smul.u32 80, %s223_s28 }
  0x17   : > { %v487_v2 = vld [vmem:[%s224_s4] ss:$0 sm:$0xff]  ;;  %s556_s28 = scalar_lea.vmem %s375_s19, 128 }
  0x18   : > { %v249_v3 = vmul.f32 %v487_v2, %v242_v1  ;;  %s237_s8 = scalar_lea.vmem %s763_s2, %s497_s5  ;;  %p557_p12 = scmp.ne.s32.totalorder %s375_s19, %s556_s28 }
  0x19   : > { %v267_v6 = vld [vmem:[%s237_s8 + $0x48] sm:$0xf]  ;;  %v266_v7 = vld [vmem:[%s237_s8 + $0x40] sm:$0xf]  ;;  %v265_v8 = vld [vmem:[%s237_s8 + $0x38] sm:$0xff]  ;;  %p564_p2 = scmp.lt.s32.totalorder %s562_s15, %s556_s28 }
  0x1a   : > { %v250_v4 = vmul.f32 %v249_v3, %v249_v3  ;;  %488 = vmatprep.subr.msk.mxu0 %vm272_vm1, %v267_v6  ;;  %v264_v9 = vld [vmem:[%s237_s8 + $0x30] sm:$0xff]  ;;  %v263_v10 = vld [vmem:[%s237_s8 + $0x28] sm:$0xff]  ;;  %v262_v12 = vld [vmem:[%s237_s8 + $0x20] sm:$0xff]  ;;  %p558_p13 = pnand %p557_p12, %p696_p4 }
  0x1b   : > { %489 = vmatpush1.msk.msra.mxu0 %vm272_vm1, %v266_v7  ;;  %v261_v13 = vld [vmem:[%s237_s8 + $0x18] sm:$0xff]  ;;  %v260_v14 = vld [vmem:[%s237_s8 + $0x10] sm:$0xff]  ;;  %v259_v15 = vld [vmem:[%s237_s8 + $0x8] sm:$0xff]  ;;  %p565_p3 = por %p564_p2, %p563_p1 }
  0x1c   : > { %v252_v5 = vsel %vm251_vm0, %v250_v4, 0.0  ;;  %303 = vmatprep.subr.mxu0 %v265_v8  ;;  %v258_v16 = vld [vmem:[%s237_s8] sm:$0xff]  ;;  %p559_p0 = pneg %p558_p13 }
  0x1d   : > { %253 = vadd.xlane.f32.xlu0 %v252_v5  ;;  %304 = vmatpush1.msra.mxu0 %v264_v9 }
  0x1e   : > { %305 = vmatprep.subr.mxu0 %v263_v10  ;;  %p566_p5 = pnand %p565_p3, %p559_p0 }
  0x1f   : > { %306 = vmatpush1.msra.mxu0 %v262_v12 }
  0x20   : > { %307 = vmatprep.subr.mxu0 %v261_v13 }
  0x21   : > { %308 = vmatpush1.msra.mxu0 %v260_v14 }
  0x22   : > { %309 = vmatprep.subr.mxu0 %v259_v15 }
  0x23   : > { %310 = vmatpush1.msra.mxu0 %v258_v16 }
  0xa6   : > { %v254_v17 = vpop.xlane.xlu0 %253 }
  0xa7   : > { %v255_v18 = vadd.f32 1e-08, %v254_v17 }
  0xa9   : > { %554 = vrsqrt.f32 %v255_v18 }
  0xb6   : > { %v555_v19 = vpop.eup %554 }
  0xb7   : > { %v257_v20 = vmul.f32 %v555_v19, %v249_v3 }
  0xb9   : > { %490 = vmatmul.mubr.msk.f32.vlgmr.msra.gmra.mxu0 %vm268_vm2, %v257_v20 }
 0x179   : > { %v345_v21 = vpop.f32.mrf.mxu0 }
 0x17b   : > { %v347_v22 = vpop.f32.mrf.mxu0 }
 0x17c   : > { %v352_v23 = vcombine.low %v345_v21, %v347_v22 }
 0x17e   : > { %354 = vst [vmem:[%s221_s18] sm:$0xff] %v352_v23 }
 0x17f   : > { %569 = shalt.err (!%p566_p5)
}
 0x180   : > { %s570_s4 = scalar_lea.hbm %s372_s26, 128  ;;  %s574_s7 = scalar_lea.hbm %s764_s3, 256 }
 0x181   : > { %p571_p6 = scmp.ne.s32.totalorder %s372_s26, %s570_s4  ;;  %p575_p10 = scmp.lt.s32.totalorder %s372_s26, %s764_s3 }
 0x182   : > { %p576_p11 = scmp.lt.s32.totalorder %s574_s7, %s570_s4 }
 0x183   : > { %p572_p7 = pnand %p571_p6, %p696_p4 }
 0x184   : > { %p577_p12 = por %p576_p11, %p575_p10 }
 0x185   : > { %p573_p9 = pneg %p572_p7 }
 0x187   : > { %p578_p13 = pnand %p577_p12, %p573_p9 }
 0x189   : > { %581 = shalt.err (!%p578_p13)
}
 0x18a   : > { %498 = dma.vmem_to_hbm [thread:$0]  (%p696_p4), %s375_s19, 128, %s372_s26, %s356_s27  }
 0x18b PF: > { %p504_p0 = scmp.ge.s32.totalorder %s632_s17, 2  ;;  %s386_s10 = sand.u32 1, %s612_s12  }
 0x18c   : > { %s387_s11 = scalar_lea.sflag [#allocation3], %s386_s10 }
 0x18d   : > { %p501_p1 = pnand %p504_p0, %p703_p8 }
 0x18f   : > { %p502_p2 = pneg %p501_p1 }
 0x191   : > { %607 = dma.done.wait (%p502_p2), %s387_s11, 128  }
 0x192   : > { %609 = vsyncadd (%p502_p2), %s387_s11, 4294967168  ;;  %s16_s17 = sadd.s32 1, %s632_s17   ;;  %s767_s12 = smov %s616_s13 }
 0x193   : > { %p13_p3 = scmp.ge.s32.totalorder %s16_s17, 4   ;;  %s768_s13 = smov %s620_s14 }
 0x194   : > { %s769_s14 = smov %s709_s25  ;;  %s770_s15 = smov %s628_s16 }
 0x195   : > { %s771_s16 = smov %s773_s20  ;;  %15 = sbr.rel (!%p13_p3) target bundleno = 4 (0x4), region = 73 }
 0x19a   :  { %392 = vsyncpa [#allocation3], 1 }
 0x19b   :  { %394 = vsyncpa [#allocation3 + $0x1], 1 }

</bundles_post_ra>
